<compile_context>
chip_gen: v5e
topology: v5e:2x2
jax: 0.10.0
libtpu: 0.0.40
codegen_flags: <defaults>
</compile_context>

<pallas_src>
import functools

import jax
import jax.numpy as jnp
from jax import lax
from jax.experimental import pallas as pl
from jax.experimental.pallas import tpu as pltpu

LN_EPS = 1e-5                 # torch.nn.LayerNorm default
_INV_SQRT2 = 0.7071067811865476


def _round_up(x, m):
    return ((x + m - 1) // m) * m


def _ffn_kernel(x_ref, gamma_ref, beta_ref, w1_ref, b1_ref, w2_ref, b2_ref,
                o_ref, xn_ref, acc_ref, *, d_true, approximate_gelu):
    j = pl.program_id(1)

    # ---- LayerNorm over the true feature dim, once per row tile (h==0) ----
    @pl.when(j == 0)
    def _():
        x = x_ref[...].astype(jnp.float32)
        d_pad = x.shape[-1]
        mean = jnp.sum(x, axis=-1, keepdims=True) * (1.0 / d_true)
        diff = x - mean
        if d_pad != d_true:
            # Mask padded lanes out of the variance sum only; padded lanes of
            # the normalized activations are zeroed by the zero-padded
            # gamma/beta (and multiply into zero-padded w1 rows anyway).
            col = lax.broadcasted_iota(jnp.int32, x.shape, dimension=1)
            diff_m = jnp.where(col < d_true, diff, 0.0)
        else:
            diff_m = diff
        var = jnp.sum(diff_m * diff_m, axis=-1, keepdims=True) * (1.0 / d_true)
        xn = diff * lax.rsqrt(var + LN_EPS)
        xn = xn * gamma_ref[...].astype(jnp.float32) \
             + beta_ref[...].astype(jnp.float32)
        xn_ref[...] = xn.astype(xn_ref.dtype)          # cached (bf16 by default)
        acc_ref[...] = jnp.zeros_like(acc_ref)

    # ---- Linear(dim -> H tile) + bias1 + GELU ----
    h = jnp.dot(xn_ref[...], w1_ref[...], preferred_element_type=jnp.float32)
    h = h + b1_ref[...].astype(jnp.float32)
    if approximate_gelu:
        h = jax.nn.gelu(h, approximate=True)           # tanh -> EUP slot
    else:
        # exact erf form, matching torch.nn.GELU() default
        h = 0.5 * h * (1.0 + lax.erf(h * jnp.float32(_INV_SQRT2)))

    # Dropout(p=0.0) is the identity.
    # TODO(synk): training-mode dropout with p>0 would need pltpu.prng_* masks.

    # ---- partial Linear(H tile -> dim), accumulated in f32 ----
    acc_ref[...] += jnp.dot(h.astype(w2_ref.dtype), w2_ref[...],
                            preferred_element_type=jnp.float32)

    # ---- finalize: bias2 + cast, only on the last H tile ----
    @pl.when(j == pl.num_programs(1) - 1)
    def _():
        o_ref[...] = (acc_ref[...]
                      + b2_ref[...].astype(jnp.float32)).astype(o_ref.dtype)


@functools.partial(
    jax.jit,
    static_argnames=("block_rows", "block_h", "matmul_dtype",
                     "approximate_gelu"))
def feed_forward(x, gamma, beta, w1, b1, w2, b2, *,
                 block_rows=256, block_h=512,
                 matmul_dtype=jnp.bfloat16, approximate_gelu=False):
    """x: (B, S, D). Weights follow PyTorch nn.Linear convention, already
    transposed to (in, out) for the kernel."""
    B, S, D = x.shape
    H = w1.shape[1]
    rows = B * S

    # Lane-dense padding of feature dims; row padding instead of a
    # divisibility assert.
    D_pad = _round_up(D, 128)
    H_pad = _round_up(H, 128)
    bm = max(16, min(_round_up(block_rows, 16), _round_up(rows, 16)))
    bh = max(128, min(_round_up(block_h, 128), H_pad))
    H_pad = _round_up(H_pad, bh)
    rows_pad = _round_up(rows, bm)

    x2d = jnp.pad(x.reshape(rows, D),
                  ((0, rows_pad - rows), (0, D_pad - D)))
    gamma2d = jnp.pad(gamma.reshape(1, D), ((0, 0), (0, D_pad - D)))
    beta2d = jnp.pad(beta.reshape(1, D), ((0, 0), (0, D_pad - D)))
    # Weights live in HBM at matmul precision (bf16 by default: halves DMA
    # bytes and VMEM footprint).
    w1p = jnp.pad(w1, ((0, D_pad - D), (0, H_pad - H))).astype(matmul_dtype)
    b1p = jnp.pad(b1.reshape(1, H), ((0, 0), (0, H_pad - H)))
    w2p = jnp.pad(w2, ((0, H_pad - H), (0, D_pad - D))).astype(matmul_dtype)
    b2p = jnp.pad(b2.reshape(1, D), ((0, 0), (0, D_pad - D)))

    grid = (rows_pad // bm, H_pad // bh)

    kernel = functools.partial(_ffn_kernel, d_true=D,
                               approximate_gelu=approximate_gelu)

    # NOTE: gamma/beta/b2 are grid-invariant; single-buffering them
    # (pipeline_mode=pl.Buffered(1)) would shave a little VMEM, but they are
    # tiny compared to the weight tiles, so default pipelining is kept.
    out2d = pl.pallas_call(
        kernel,
        out_shape=jax.ShapeDtypeStruct((rows_pad, D_pad), x.dtype),
        grid_spec=pltpu.PrefetchScalarGridSpec(
            num_scalar_prefetch=0,
            grid=grid,
            in_specs=[
                pl.BlockSpec((bm, D_pad), lambda i, j: (i, 0)),   # x rows
                pl.BlockSpec((1, D_pad), lambda i, j: (0, 0)),    # gamma
                pl.BlockSpec((1, D_pad), lambda i, j: (0, 0)),    # beta
                pl.BlockSpec((D_pad, bh), lambda i, j: (0, j)),   # w1 tile
                pl.BlockSpec((1, bh), lambda i, j: (0, j)),       # b1 tile
                pl.BlockSpec((bh, D_pad), lambda i, j: (j, 0)),   # w2 tile
                pl.BlockSpec((1, D_pad), lambda i, j: (0, 0)),    # b2
            ],
            out_specs=pl.BlockSpec((bm, D_pad), lambda i, j: (i, 0)),
            scratch_shapes=[
                pltpu.VMEM((bm, D_pad), matmul_dtype),  # cached LN output
                pltpu.VMEM((bm, D_pad), jnp.float32),   # f32 accumulator
            ],
        ),
        compiler_params=pltpu.CompilerParams(
            dimension_semantics=("parallel", "arbitrary"),
            vmem_limit_bytes=64 * 1024 * 1024,
        ),
    )(x2d, gamma2d, beta2d, w1p, b1p, w2p, b2p)

    return out2d[:rows, :D].reshape(B, S, D)


def _reference(x, gamma, beta, w1, b1, w2, b2):
    """Pure-JAX f32 reference mirroring the PyTorch module."""
    mean = jnp.mean(x, axis=-1, keepdims=True)
    var = jnp.mean((x - mean) ** 2, axis=-1, keepdims=True)
    xn = (x - mean) / jnp.sqrt(var + LN_EPS) * gamma + beta
    h = xn @ w1 + b1
    h = jax.nn.gelu(h, approximate=False)
    return h @ w2 + b2


if __name__ == "__main__":
    # Small shapes implied by the module: (batch, seq, dim) with hidden_dim.
    B, S, D, H = 2, 8, 32, 64

    key = jax.random.PRNGKey(0)
    kx, kg, kb, kw1, kb1, kw2, kb2 = jax.random.split(key, 7)

    x = jax.random.normal(kx, (B, S, D), dtype=jnp.float32)

    gamma = 1.0 + 0.1 * jax.random.normal(kg, (D,), dtype=jnp.float32)
    beta = 0.1 * jax.random.normal(kb, (D,), dtype=jnp.float32)
    # PyTorch Linear weight is (out, in); store transposed as (in, out).
    w1 = (jax.random.normal(kw1, (H, D), dtype=jnp.float32) * (1.0 / D ** 0.5)).T
    b1 = 0.01 * jax.random.normal(kb1, (H,), dtype=jnp.float32)
    w2 = (jax.random.normal(kw2, (D, H), dtype=jnp.float32) * (1.0 / H ** 0.5)).T
    b2 = 0.01 * jax.random.normal(kb2, (D,), dtype=jnp.float32)

    ref = _reference(x, gamma, beta, w1, b1, w2, b2)

    # Default fast path: bf16 matmul inputs, f32 accumulation.
    out_bf16 = jax.block_until_ready(
        feed_forward(x, gamma, beta, w1, b1, w2, b2))
    assert out_bf16.shape == (B, S, D)
    assert jnp.allclose(out_bf16, ref, atol=5e-2, rtol=5e-2), \
        "bf16 path mismatch vs reference"

    # Strict-precision path: f32 matmuls, tight tolerance vs reference.
    out_f32 = jax.block_until_ready(
        feed_forward(x, gamma, beta, w1, b1, w2, b2,
                     matmul_dtype=jnp.float32))
    assert jnp.allclose(out_f32, ref, atol=1e-4, rtol=1e-4), \
        "f32 path mismatch vs reference"

    print("KERNEL_OK")
</pallas_src>

<mosaic_0001>
module attributes {stable_mosaic.version = 11 : i64} {
  func.func @_ffn_kernel(%arg0: i32, %arg1: i32, %arg2: memref<16x128xf32, #tpu.memory_space<vmem>>, %arg3: memref<1x128xf32, #tpu.memory_space<vmem>>, %arg4: memref<1x128xf32, #tpu.memory_space<vmem>>, %arg5: memref<128x128xbf16, #tpu.memory_space<vmem>>, %arg6: memref<1x128xf32, #tpu.memory_space<vmem>>, %arg7: memref<128x128xbf16, #tpu.memory_space<vmem>>, %arg8: memref<1x128xf32, #tpu.memory_space<vmem>>, %arg9: memref<16x128xf32, #tpu.memory_space<vmem>>, %arg10: memref<16x128xbf16, #tpu.memory_space<vmem>>, %arg11: memref<16x128xf32, #tpu.memory_space<vmem>>) attributes {dimension_semantics = [#tpu.dimension_semantics<parallel>, #tpu.dimension_semantics<arbitrary>], iteration_bounds = array<i64: 1, 1>, scalar_prefetch = 0 : i64, scratch_operands = 2 : i64, tpu.core_type = #tpu.core_type<tc>, window_params = [{transform_indices = @transform_0, window_bounds = array<i64: 16, 128>}, {pipeline_mode = #tpu.pipeline_mode<synchronous>, transform_indices = @transform_1, window_bounds = array<i64: 1, 128>}, {pipeline_mode = #tpu.pipeline_mode<synchronous>, transform_indices = @transform_2, window_bounds = array<i64: 1, 128>}, {transform_indices = @transform_3, window_bounds = array<i64: 128, 128>}, {transform_indices = @transform_4, window_bounds = array<i64: 1, 128>}, {transform_indices = @transform_5, window_bounds = array<i64: 128, 128>}, {pipeline_mode = #tpu.pipeline_mode<synchronous>, transform_indices = @transform_6, window_bounds = array<i64: 1, 128>}, {transform_indices = @transform_7, window_bounds = array<i64: 16, 128>}]} {
    %c0_i32 = arith.constant 0 : i32
    %0 = arith.cmpi eq, %arg1, %c0_i32 : i32
    %1 = arith.extui %0 : i1 to i32
    %c0_i32_0 = arith.constant 0 : i32
    %2 = arith.cmpi ne, %1, %c0_i32_0 : i32
    scf.if %2 {
      %c0_18 = arith.constant 0 : index
      %c0_19 = arith.constant 0 : index
      %26 = vector.load %arg2[%c0_18, %c0_19] : memref<16x128xf32, #tpu.memory_space<vmem>>, vector<16x128xf32>
      %cst_20 = arith.constant dense<0.000000e+00> : vector<16xf32>
      %27 = vector.multi_reduction <add>, %26, %cst_20 [1] : vector<16x128xf32> to vector<16xf32>
      %28 = vector.shape_cast %27 : vector<16xf32> to vector<16x1xf32>
      %cst_21 = arith.constant 3.125000e-02 : f32
      %29 = vector.broadcast %cst_21 : f32 to vector<16x1xf32>
      %30 = arith.mulf %28, %29 : vector<16x1xf32>
      %31 = vector.broadcast %30 : vector<16x1xf32> to vector<16x128xf32>
      %32 = arith.subf %26, %31 : vector<16x128xf32>
      %33 = tpu.iota {dimensions = array<i32: 1>} : vector<16x128xi32>
      %c32_i32 = arith.constant 32 : i32
      %34 = vector.broadcast %c32_i32 : i32 to vector<16x128xi32>
      %35 = arith.cmpi slt, %33, %34 : vector<16x128xi32>
      %cst_22 = arith.constant 0.000000e+00 : f32
      %36 = vector.broadcast %cst_22 : f32 to vector<16x128xf32>
      %37 = arith.select %35, %32, %36 : vector<16x128xi1>, vector<16x128xf32>
      %38 = arith.mulf %37, %37 : vector<16x128xf32>
      %cst_23 = arith.constant dense<0.000000e+00> : vector<16xf32>
      %39 = vector.multi_reduction <add>, %38, %cst_23 [1] : vector<16x128xf32> to vector<16xf32>
      %40 = vector.shape_cast %39 : vector<16xf32> to vector<16x1xf32>
      %cst_24 = arith.constant 3.125000e-02 : f32
      %41 = vector.broadcast %cst_24 : f32 to vector<16x1xf32>
      %42 = arith.mulf %40, %41 : vector<16x1xf32>
      %cst_25 = arith.constant 9.99999974E-6 : f32
      %43 = vector.broadcast %cst_25 : f32 to vector<16x1xf32>
      %44 = arith.addf %42, %43 : vector<16x1xf32>
      %45 = math.rsqrt %44 : vector<16x1xf32>
      %46 = vector.broadcast %45 : vector<16x1xf32> to vector<16x128xf32>
      %47 = arith.mulf %32, %46 : vector<16x128xf32>
      %c0_26 = arith.constant 0 : index
      %c0_27 = arith.constant 0 : index
      %48 = vector.load %arg3[%c0_26, %c0_27] : memref<1x128xf32, #tpu.memory_space<vmem>>, vector<1x128xf32>
      %49 = vector.broadcast %48 : vector<1x128xf32> to vector<16x128xf32>
      %50 = arith.mulf %47, %49 : vector<16x128xf32>
      %c0_28 = arith.constant 0 : index
      %c0_29 = arith.constant 0 : index
      %51 = vector.load %arg4[%c0_28, %c0_29] : memref<1x128xf32, #tpu.memory_space<vmem>>, vector<1x128xf32>
      %52 = vector.broadcast %51 : vector<1x128xf32> to vector<16x128xf32>
      %53 = arith.addf %50, %52 : vector<16x128xf32>
      %54 = arith.truncf %53 : vector<16x128xf32> to vector<16x128xbf16>
      %c0_30 = arith.constant 0 : index
      %c0_31 = arith.constant 0 : index
      %55 = vector.load %arg10[%c0_30, %c0_31] : memref<16x128xbf16, #tpu.memory_space<vmem>>, vector<16x128xbf16>
      tpu.vector_store %arg10[%c0_30, %c0_31], %54 {strides = array<i32>} : memref<16x128xbf16, #tpu.memory_space<vmem>>, vector<16x128xbf16>,
      %cst_32 = arith.constant 0.000000e+00 : f32
      %56 = vector.broadcast %cst_32 : f32 to vector<16x128xf32>
      %c0_33 = arith.constant 0 : index
      %c0_34 = arith.constant 0 : index
      %57 = vector.load %arg11[%c0_33, %c0_34] : memref<16x128xf32, #tpu.memory_space<vmem>>, vector<16x128xf32>
      tpu.vector_store %arg11[%c0_33, %c0_34], %56 {strides = array<i32>} : memref<16x128xf32, #tpu.memory_space<vmem>>, vector<16x128xf32>,
    } else {
    }
    %c0 = arith.constant 0 : index
    %c0_1 = arith.constant 0 : index
    %3 = vector.load %arg10[%c0, %c0_1] : memref<16x128xbf16, #tpu.memory_space<vmem>>, vector<16x128xbf16>
    %c0_2 = arith.constant 0 : index
    %c0_3 = arith.constant 0 : index
    %4 = vector.load %arg5[%c0_2, %c0_3] : memref<128x128xbf16, #tpu.memory_space<vmem>>, vector<128x128xbf16>
    %cst = arith.constant dense<0.000000e+00> : vector<16x128xf32>
    %5 = tpu.matmul %3, %4, %cst {dimension_numbers = #tpu.dot_dimension_numbers<[1], [0], [0], [1], [0, 0, 1, 1], [], []>} : vector<16x128xbf16>, vector<128x128xbf16>, vector<16x128xf32> -> vector<16x128xf32>
    %c0_4 = arith.constant 0 : index
    %c0_5 = arith.constant 0 : index
    %6 = vector.load %arg6[%c0_4, %c0_5] : memref<1x128xf32, #tpu.memory_space<vmem>>, vector<1x128xf32>
    %7 = vector.broadcast %6 : vector<1x128xf32> to vector<16x128xf32>
    %8 = arith.addf %5, %7 : vector<16x128xf32>
    %cst_6 = arith.constant 5.000000e-01 : f32
    %9 = vector.broadcast %cst_6 : f32 to vector<16x128xf32>
    %10 = arith.mulf %9, %8 : vector<16x128xf32>
    %cst_7 = arith.constant 0.707106769 : f32
    %11 = vector.broadcast %cst_7 : f32 to vector<16x128xf32>
    %12 = arith.mulf %8, %11 : vector<16x128xf32>
    %13 = math.erf %12 : vector<16x128xf32>
    %cst_8 = arith.constant 1.000000e+00 : f32
    %14 = vector.broadcast %cst_8 : f32 to vector<16x128xf32>
    %15 = arith.addf %14, %13 : vector<16x128xf32>
    %16 = arith.mulf %10, %15 : vector<16x128xf32>
    %c0_9 = arith.constant 0 : index
    %c0_10 = arith.constant 0 : index
    %17 = vector.load %arg11[%c0_9, %c0_10] : memref<16x128xf32, #tpu.memory_space<vmem>>, vector<16x128xf32>
    %18 = arith.truncf %16 : vector<16x128xf32> to vector<16x128xbf16>
    %c0_11 = arith.constant 0 : index
    %c0_12 = arith.constant 0 : index
    %19 = vector.load %arg7[%c0_11, %c0_12] : memref<128x128xbf16, #tpu.memory_space<vmem>>, vector<128x128xbf16>
    %cst_13 = arith.constant dense<0.000000e+00> : vector<16x128xf32>
    %20 = tpu.matmul %18, %19, %cst_13 {dimension_numbers = #tpu.dot_dimension_numbers<[1], [0], [0], [1], [0, 0, 1, 1], [], []>} : vector<16x128xbf16>, vector<128x128xbf16>, vector<16x128xf32> -> vector<16x128xf32>
    %21 = arith.addf %17, %20 : vector<16x128xf32>
    %c0_14 = arith.constant 0 : index
    %c0_15 = arith.constant 0 : index
    %22 = vector.load %arg11[%c0_14, %c0_15] : memref<16x128xf32, #tpu.memory_space<vmem>>, vector<16x128xf32>
    tpu.vector_store %arg11[%c0_14, %c0_15], %21 {strides = array<i32>} : memref<16x128xf32, #tpu.memory_space<vmem>>, vector<16x128xf32>,
    %c0_i32_16 = arith.constant 0 : i32
    %23 = arith.cmpi eq, %arg1, %c0_i32_16 : i32
    %24 = arith.extui %23 : i1 to i32
    %c0_i32_17 = arith.constant 0 : i32
    %25 = arith.cmpi ne, %24, %c0_i32_17 : i32
    scf.if %25 {
      %c0_18 = arith.constant 0 : index
      %c0_19 = arith.constant 0 : index
      %26 = vector.load %arg11[%c0_18, %c0_19] : memref<16x128xf32, #tpu.memory_space<vmem>>, vector<16x128xf32>
      %c0_20 = arith.constant 0 : index
      %c0_21 = arith.constant 0 : index
      %27 = vector.load %arg8[%c0_20, %c0_21] : memref<1x128xf32, #tpu.memory_space<vmem>>, vector<1x128xf32>
      %28 = vector.broadcast %27 : vector<1x128xf32> to vector<16x128xf32>
      %29 = arith.addf %26, %28 : vector<16x128xf32>
      %c0_22 = arith.constant 0 : index
      %c0_23 = arith.constant 0 : index
      %30 = vector.load %arg9[%c0_22, %c0_23] : memref<16x128xf32, #tpu.memory_space<vmem>>, vector<16x128xf32>
      tpu.vector_store %arg9[%c0_22, %c0_23], %29 {strides = array<i32>} : memref<16x128xf32, #tpu.memory_space<vmem>>, vector<16x128xf32>,
    } else {
    }
    return
  }
  func.func @transform_0(%arg0: i32, %arg1: i32) -> (i32, i32) {
    %c0_i32 = arith.constant 0 : i32
    %c0_i32_0 = arith.constant 0 : i32
    return %arg0, %c0_i32 : i32, i32
  }
  func.func @transform_1(%arg0: i32, %arg1: i32) -> (i32, i32) {
    %c0_i32 = arith.constant 0 : i32
    %c0_i32_0 = arith.constant 0 : i32
    %c0_i32_1 = arith.constant 0 : i32
    return %c0_i32, %c0_i32_0 : i32, i32
  }
  func.func @transform_2(%arg0: i32, %arg1: i32) -> (i32, i32) {
    %c0_i32 = arith.constant 0 : i32
    %c0_i32_0 = arith.constant 0 : i32
    %c0_i32_1 = arith.constant 0 : i32
    return %c0_i32, %c0_i32_0 : i32, i32
  }
  func.func @transform_3(%arg0: i32, %arg1: i32) -> (i32, i32) {
    %c0_i32 = arith.constant 0 : i32
    %c0_i32_0 = arith.constant 0 : i32
    return %c0_i32, %arg1 : i32, i32
  }
  func.func @transform_4(%arg0: i32, %arg1: i32) -> (i32, i32) {
    %c0_i32 = arith.constant 0 : i32
    %c0_i32_0 = arith.constant 0 : i32
    return %c0_i32, %arg1 : i32, i32
  }
  func.func @transform_5(%arg0: i32, %arg1: i32) -> (i32, i32) {
    %c0_i32 = arith.constant 0 : i32
    %c0_i32_0 = arith.constant 0 : i32
    return %arg1, %c0_i32 : i32, i32
  }
  func.func @transform_6(%arg0: i32, %arg1: i32) -> (i32, i32) {
    %c0_i32 = arith.constant 0 : i32
    %c0_i32_0 = arith.constant 0 : i32
    %c0_i32_1 = arith.constant 0 : i32
    return %c0_i32, %c0_i32_0 : i32, i32
  }
  func.func @transform_7(%arg0: i32, %arg1: i32) -> (i32, i32) {
    %c0_i32 = arith.constant 0 : i32
    %c0_i32_0 = arith.constant 0 : i32
    return %arg0, %c0_i32 : i32, i32
  }
}

</mosaic_0001>

<bundles_post_ra>
// kernel: feed_forward.1
= control target key start
LH: loop header
LB: loop body
LE: loop exit
PB: predicated region body
PF: predicated region fallthrough
CT: control target
= control target key end

     0   :  { %v40_v2 = vlaneseq  ;;  %s609_s0 = inlined_call_operand.vmem [shape: f32[16,128], index: 0, kind: input, shape index: {}]   ;;  %s610_s1 = inlined_call_operand.vmem [shape: f32[1,128], index: 1, kind: input, shape index: {}]   ;;  %s611_s2 = inlined_call_operand.vmem [shape: f32[1,128], index: 2, kind: input, shape index: {}]   ;;  %s612_s4 = inlined_call_operand.vmem [shape: f32[1,128], index: 4, kind: input, shape index: {}]   ;;  %s613_s3 = inlined_call_operand.vmem [shape: bf16[128,128], index: 3, kind: input, shape index: {}]   ;;  %s614_s6 = inlined_call_operand.vmem [shape: f32[1,128], index: 6, kind: input, shape index: {}]   ;;  %s615_s5 = inlined_call_operand.vmem [shape: bf16[128,128], index: 5, kind: input, shape index: {}]   ;;  %s616_s7 = inlined_call_operand.vmem [shape: f32[16,128], index: 7, kind: output, shape index: {}]  }
   0x1   :  { %v30_v0 = vld [vmem:[%s609_s0] sm:$0xff]  ;;  %v31_v1 = vld [vmem:[%s609_s0 + $0x8] sm:$0xff]  ;;  %v453_v14 = vld [vmem:[%s613_s3 + $0x38] sm:$0xff] }
   0x2   :  { %32 = vadd.xlane.f32.xlu0 %v30_v0  ;;  %v41_v3 = vand.u32 127, %v40_v2  ;;  %171 = vmatpush.bf16.msra.mxu0 %v453_v14  ;;  %v452_v15 = vld [vmem:[%s613_s3 + $0x30] sm:$0xff]  ;;  %v451_v16 = vld [vmem:[%s613_s3 + $0x28] sm:$0xff]  ;;  %v450_v17 = vld [vmem:[%s613_s3 + $0x20] sm:$0xff] }
   0x3   :  { %v449_v18 = vld [vmem:[%s613_s3 + $0x18] sm:$0xff]  ;;  %v448_v22 = vld [vmem:[%s613_s3 + $0x10] sm:$0xff]  ;;  %v447_v23 = vld [vmem:[%s613_s3 + $0x8] sm:$0xff] }
   0x4   :  { %vm42_vm0 = vcmp.lt.s32.totalorder %v41_v3, 32  ;;  %v446_v26 = vld [vmem:[%s613_s3] sm:$0xff]  ;;  %v461_v53 = vld [vmem:[%s615_s5 + $0x38] sm:$0xff]  ;;  %v460_v57 = vld [vmem:[%s615_s5 + $0x30] sm:$0xff] }
   0x5   :  { %v467_v40 = vld [vmem:[%s610_s1] ss:$0 sm:$0xff]  ;;  %340 = vmatpush.bf16.msra.mxu1 %v461_v53  ;;  %v459_v59 = vld [vmem:[%s615_s5 + $0x28] sm:$0xff] }
   0x6   :  { %172 = vmatpush.bf16.msra.mxu0 %v452_v15  ;;  %v468_v44 = vld [vmem:[%s611_s2] ss:$0 sm:$0xff] }
   0x7   :  { %v469_v52 = vld [vmem:[%s612_s4] ss:$0 sm:$0xff] }
   0x9   :  { %341 = vmatpush.bf16.msra.mxu1 %v460_v57 }
   0xa   :  { %34 = vadd.xlane.f32.xlu0 %v31_v1  ;;  %173 = vmatpush.bf16.msra.mxu0 %v451_v16 }
   0xd   :  { %342 = vmatpush.bf16.msra.mxu1 %v459_v59 }
   0xe   :  { %174 = vmatpush.bf16.msra.mxu0 %v450_v17 }
  0x12   :  { %175 = vmatpush.bf16.msra.mxu0 %v449_v18 }
  0x16   :  { %176 = vmatpush.bf16.msra.mxu0 %v448_v22 }
  0x1a   :  { %177 = vmatpush.bf16.msra.mxu0 %v447_v23 }
  0x1e   :  { %178 = vmatpush.bf16.msra.mxu0 %v446_v26 }
  0x75   :  { %v33_v4 = vpop.xlane.xlu0 %32 }
  0x76   :  { %v36_v5 = vmul.f32 0.03125, %v33_v4 }
  0x78   :  { %v38_v6 = vsub.f32 %v30_v0, %v36_v5  ;;  %v458_v0 = vld [vmem:[%s615_s5 + $0x20] sm:$0xff] }
  0x79   :  { %343 = vmatpush.bf16.msra.mxu1 %v458_v0 }
  0x7a   :  { %v43_v7 = vsel %vm42_vm0, %v38_v6, 0.0 }
  0x7b   :  { %v45_v8 = vmul.f32 %v43_v7, %v43_v7 }
  0x7d   :  { %47 = vadd.xlane.f32.xlu1 %v45_v8  ;;  %v35_v9 = vpop.xlane.xlu0 %34 }
  0x7e   :  { %v37_v10 = vmul.f32 0.03125, %v35_v9 }
  0x80   :  { %v39_v11 = vsub.f32 %v31_v1, %v37_v10 }
  0x82   :  { %v44_v12 = vsel %vm42_vm0, %v39_v11, 0.0 }
  0x83   :  { %v46_v13 = vmul.f32 %v44_v12, %v44_v12  ;;  %v456_v12 = vld [vmem:[%s615_s5 + $0x10] sm:$0xff] }
  0x85   :  { %49 = vadd.xlane.f32.xlu1 %v46_v13 }
  0xf0   :  { %v48_v19 = vpop.xlane.xlu1 %47 }
  0xf1   :  { %v51_v20 = vmul.f32 0.03125, %v48_v19 }
  0xf3   :  { %v53_v21 = vadd.f32 1e-05, %v51_v20  ;;  %v455_v20 = vld [vmem:[%s615_s5 + $0x8] sm:$0xff] }
  0xf5   :  { %471 = vrsqrt.f32 %v53_v21  ;;  %vm61_vm2 = vweird.f32 %v53_v21 }
  0xf8   :  { %v50_v24 = vpop.xlane.xlu1 %49 }
  0xf9   :  { %v52_v25 = vmul.f32 0.03125, %v50_v24 }
  0xfb   :  { %v472_v27 = vpop.eup %471  ;;  %v54_v28 = vadd.f32 1e-05, %v52_v25 }
  0xfc   :  { %v56_v29 = vmul.f32 %v472_v27, %v53_v21  ;;  %vm62_vm1 = vweird.f32 %v472_v27 }
  0xfd   :  { %473 = vrsqrt.f32 %v54_v28  ;;  %vm63_vm3 = vmor %vm61_vm2, %vm62_vm1  ;;  %vm71_vm5 = vweird.f32 %v54_v28 }
  0xfe   :  { %v57_v30 = vmul.f32 %v472_v27, %v56_v29 }
 0x100   :  { %v58_v31 = vmul.f32 0.5, %v57_v30 }
 0x102   :  { %v59_v32 = vsub.f32 1.5, %v58_v31 }
 0x103   :  { %v474_v33 = vpop.eup %473 }
 0x104   :  { %v60_v34 = vmul.f32 %v472_v27, %v59_v32  ;;  %v66_v35 = vmul.f32 %v474_v33, %v54_v28  ;;  %vm72_vm4 = vweird.f32 %v474_v33 }
 0x105   :  { %vm73_vm6 = vmor %vm71_vm5, %vm72_vm4 }
 0x106   :  { %v67_v36 = vmul.f32 %v474_v33, %v66_v35  ;;  %v64_v37 = vsel %vm63_vm3, %v472_v27, %v60_v34  ;;  %v454_v27 = vld [vmem:[%s615_s5] sm:$0xff] }
 0x107   :  { %v75_v41 = vmul.f32 %v64_v37, %v38_v6  ;;  %v457_v6 = vld [vmem:[%s615_s5 + $0x18] sm:$0xff] }
 0x108   :  { %v68_v38 = vmul.f32 0.5, %v67_v36  ;;  %344 = vmatpush.bf16.msra.mxu1 %v457_v6 }
 0x109   :  { %v81_v45 = vmul.f32 %v467_v40, %v75_v41 }
 0x10a   :  { %v69_v39 = vsub.f32 1.5, %v68_v38 }
 0x10b   :  { %v87_v48 = vadd.f32 %v468_v44, %v81_v45 }
 0x10c   :  { %v70_v42 = vmul.f32 %v474_v33, %v69_v39  ;;  %345 = vmatpush.bf16.msra.mxu1 %v456_v12 }
 0x10e   :  { %v74_v43 = vsel %vm73_vm6, %v474_v33, %v70_v42 }
 0x10f   :  { %v76_v46 = vmul.f32 %v74_v43, %v39_v11 }
 0x110   :  { %346 = vmatpush.bf16.msra.mxu1 %v455_v20 }
 0x111   :  { %v82_v47 = vmul.f32 %v467_v40, %v76_v46 }
 0x113   :  { %v88_v49 = vadd.f32 %v468_v44, %v82_v47 }
 0x114   :  { %347 = vmatpush.bf16.msra.mxu1 %v454_v27 }
 0x115   :  { %v465_v50 = vpack.c.bf16 %v88_v49, %v87_v48 }
 0x117   :  { %466 = vst [vmem:[#allocation2] sm:$0xff] %v465_v50  }
 0x11e   :  { %v445_v51 = vld [vmem:[#allocation2] sm:$0xff] }
 0x11f   :  { %179 = vmatmul.bf16.vlgmr.msra.gmra.mxu0 %v445_v51 }
 0x19c   :  { %v180_v54 = vpop.f32.mrf.mxu0 }
 0x19d   :  { %v561_v55 = vadd.f32 %v469_v52, %v180_v54 }
 0x19f   :  { %v564_v56 = vmul.f32 0.70710677, %v561_v55 }
 0x1a1   :  { %v189_v58 = vmul.f32 %v564_v56, %v564_v56 }
 0x1a3   :  { %v190_v60 = vmin.f32 %v189_v58, 16.0 }
 0x1a4   :  { %v182_v61 = vpop.f32.mrf.mxu0 }
 0x1a5   :  { %v191_v62 = vmul.f32 2.1237322e-06, %v190_v60  ;;  %v574_v63 = vadd.f32 %v469_v52, %v182_v61  ;;  %v202_v1 = vmul.f32 3.8918573e-05, %v190_v60 }
 0x1a7   :  { %v192_v2 = vadd.f32 0.00028619796, %v191_v62  ;;  %v580_v3 = vmul.f32 0.70710677, %v574_v63  ;;  %v203_v4 = vadd.f32 0.001143296, %v202_v1 }
 0x1a9   :  { %v229_v5 = vmul.f32 %v580_v3, %v580_v3  ;;  %v193_v7 = vmul.f32 %v192_v2, %v190_v60  ;;  %v204_v8 = vmul.f32 %v203_v4, %v190_v60 }
 0x1ab   :  { %v230_v9 = vmin.f32 %v229_v5, 16.0  ;;  %v205_v10 = vadd.f32 0.014752088, %v204_v8  ;;  %v194_v14 = vadd.f32 0.0036580483, %v193_v7 }
 0x1ad   :  { %v231_v11 = vmul.f32 2.1237322e-06, %v230_v9  ;;  %v242_v13 = vmul.f32 3.8918573e-05, %v230_v9  ;;  %v206_v15 = vmul.f32 %v205_v10, %v190_v60  ;;  %v195_v22 = vmul.f32 %v194_v14, %v190_v60 }
 0x1ae   :  { %v186_v14 = vmul.f32 0.5, %v574_v63 }
 0x1af   :  { %v232_v16 = vadd.f32 0.00028619796, %v231_v11  ;;  %v243_v17 = vadd.f32 0.001143296, %v242_v13  ;;  %v207_v18 = vadd.f32 0.112945676, %v206_v15 }
 0x1b0   :  { %v196_v29 = vadd.f32 0.05243302, %v195_v22  ;;  %v185_v13 = vmul.f32 0.5, %v561_v55 }
 0x1b1   :  { %v233_v19 = vmul.f32 %v232_v16, %v230_v9  ;;  %v244_v21 = vmul.f32 %v243_v17, %v230_v9  ;;  %v208_v23 = vmul.f32 %v207_v18, %v190_v60 }
 0x1b2   :  { %v197_v35 = vmul.f32 %v196_v29, %v190_v60 }
 0x1b3   :  { %v234_v24 = vadd.f32 0.0036580483, %v233_v19  ;;  %v245_v25 = vadd.f32 0.014752088, %v244_v21  ;;  %v209_v26 = vadd.f32 0.4994258, %v208_v23 }
 0x1b4   :  { %v198_v39 = vadd.f32 0.18741608, %v197_v35 }
 0x1b5   :  { %v246_v28 = vmul.f32 %v245_v25, %v230_v9  ;;  %v210_v30 = vmul.f32 %v209_v26, %v190_v60  ;;  %v235_v31 = vmul.f32 %v234_v24, %v230_v9 }
 0x1b6   :  { %v199_v44 = vmul.f32 %v198_v39, %v190_v60 }
 0x1b7   :  { %v247_v32 = vadd.f32 0.112945676, %v246_v28  ;;  %v211_v33 = vadd.f32 1.0, %v210_v30  ;;  %v236_v36 = vadd.f32 0.05243302, %v235_v31 }
 0x1b8   :  { %v200_v50 = vadd.f32 1.1283791, %v199_v44 }
 0x1b9   :  { %v248_v34 = vmul.f32 %v247_v32, %v230_v9  ;;  %475 = vrcp.f32 %v211_v33  ;;  %v237_v40 = vmul.f32 %v236_v36, %v230_v9  ;;  %v223_v47 = vand.u32 2147483648, %v211_v33 }
 0x1ba   :  { %v221_v49 = vand.u32 2147483647, %v211_v33  ;;  %vm217_vm8 = vweird.f32 %v211_v33  ;;  %v201_v59 = vmul.f32 %v200_v50, %v564_v56 }
 0x1bb   :  { %v249_v37 = vadd.f32 0.4994258, %v248_v34  ;;  %v238_v45 = vadd.f32 0.18741608, %v237_v40  ;;  %v224_v54 = vor.u32 1.1754944e-38, %v223_v47 }
 0x1bc   :  { %vm222_vm10 = vcmp.eq.f32.partialorder %v221_v49, 8.507059e+37 }
 0x1bd   :  { %v250_v38 = vmul.f32 %v249_v37, %v230_v9  ;;  %v239_v52 = vmul.f32 %v238_v45, %v230_v9 }
 0x1bf   :  { %v251_v41 = vadd.f32 1.0, %v250_v38  ;;  %v476_v42 = vpop.eup %475  ;;  %v240_v62 = vadd.f32 1.1283791, %v239_v52 }
 0x1c0   :  { %v213_v43 = vmul.f32 %v476_v42, %v211_v33  ;;  %vm218_vm7 = vweird.f32 %v476_v42 }
 0x1c1   :  { %477 = vrcp.f32 %v251_v41  ;;  %vm219_vm9 = vmor %vm217_vm8, %vm218_vm7  ;;  %v263_v0 = vand.u32 2147483648, %v251_v41  ;;  %v261_v4 = vand.u32 2147483647, %v251_v41  ;;  %vm257_vm12 = vweird.f32 %v251_v41 }
 0x1c2   :  { %v214_v46 = vsub.f32 1.0, %v213_v43  ;;  %v241_v7 = vmul.f32 %v240_v62, %v580_v3  ;;  %v470_v3 = vld [vmem:[%s614_s6] ss:$0 sm:$0xff] }
 0x1c3   :  { %v264_v6 = vor.u32 1.1754944e-38, %v263_v0  ;;  %vm262_vm14 = vcmp.eq.f32.partialorder %v261_v4, 8.507059e+37 }
 0x1c4   :  { %v215_v48 = vmul.f32 %v476_v42, %v214_v46 }
 0x1c6   :  { %v216_v53 = vadd.f32 %v476_v42, %v215_v48 }
 0x1c7   :  { %v478_v51 = vpop.eup %477 }
 0x1c8   :  { %v253_v57 = vmul.f32 %v478_v51, %v251_v41  ;;  %v220_v58 = vsel %vm219_vm9, %v476_v42, %v216_v53  ;;  %vm258_vm11 = vweird.f32 %v478_v51 }
 0x1c9   :  { %v225_v61 = vsel %vm222_vm10, %v224_v54, %v220_v58  ;;  %vm259_vm13 = vmor %vm257_vm12, %vm258_vm11 }
 0x1ca   :  { %v254_v60 = vsub.f32 1.0, %v253_v57  ;;  %v226_v1 = vmul.f32 %v225_v61, %v201_v59 }
 0x1cc   :  { %v255_v2 = vmul.f32 %v478_v51, %v254_v60  ;;  %v411_v8 = vclamps-f32 %v226_v1, 1.0 }
 0x1ce   :  { %v256_v5 = vadd.f32 %v478_v51, %v255_v2  ;;  %v269_v12 = vadd.f32 1.0, %v411_v8 }
 0x1d0   :  { %v260_v9 = vsel %vm259_vm13, %v478_v51, %v256_v5  ;;  %v271_v16 = vmul.f32 %v269_v12, %v185_v13 }
 0x1d1   :  { %v265_v10 = vsel %vm262_vm14, %v264_v6, %v260_v9 }
 0x1d2   :  { %v266_v11 = vmul.f32 %v265_v10, %v241_v7 }
 0x1d4   :  { %v412_v56 = vclamps-f32 %v266_v11, 1.0 }
 0x1d6   :  { %v270_v15 = vadd.f32 1.0, %v412_v56 }
 0x1d8   :  { %v272_v17 = vmul.f32 %v270_v15, %v186_v14 }
 0x1da   :  { %v275_v18 = vpack.c.bf16 %v272_v17, %v271_v16 }
 0x1dc   :  { %348 = vmatmul.bf16.vlgmr.msra.gmra.mxu1 %v275_v18 }
 0x259   :  { %v349_v19 = vpop.f32.mrf.mxu1 }
 0x25a   :  { %v367_v20 = vadd.f32 %v470_v3, %v349_v19 }
 0x25c   :  { %369 = vst [vmem:[%s616_s7] sm:$0xff] %v367_v20 }
 0x261   :  { %v351_v21 = vpop.f32.mrf.mxu1 }
 0x262   :  { %v368_v22 = vadd.f32 %v470_v3, %v351_v21 }
 0x264   :  { %370 = vst [vmem:[%s616_s7 + $0x8] sm:$0xff] %v368_v22 }

</bundles_post_ra>
